<compile_context>
chip_gen: v5e
topology: v5e:2x2
jax: 0.10.0
libtpu: 0.0.40
codegen_flags: <defaults>
</compile_context>

<pallas_src>
import functools

import jax
import jax.numpy as jnp
from jax.experimental import pallas as pl
from jax.experimental.pallas import tpu as pltpu


# ---------------------------------------------------------------------------
# Kernels
# ---------------------------------------------------------------------------

def _bn_fused_kernel(x_ref, gamma_ref, beta_ref, rm_ref, rv_ref,
                     y_ref, nrm_ref, nrv_ref, *, eps, momentum):
    """Single-pass path: the full batch column (N, TF) is resident in VMEM."""
    x = x_ref[...].astype(jnp.float32)          # (N, TF)
    n = x.shape[0]
    inv_n = 1.0 / n

    # Per-feature stats over the batch (sublane) axis. Two-pass variance
    # (diff*diff) — biased, matching x.var(dim=0, unbiased=False).
    mean = jnp.sum(x, axis=0, keepdims=True) * inv_n             # (1, TF)
    diff = x - mean
    var = jnp.sum(diff * diff, axis=0, keepdims=True) * inv_n    # (1, TF)

    inv_std = jax.lax.rsqrt(var + eps)
    gamma = gamma_ref[...].astype(jnp.float32)
    beta = beta_ref[...].astype(jnp.float32)

    # Fold the affine into per-feature scale/shift: y = x*scale + shift.
    scale = gamma * inv_std
    shift = beta - mean * scale
    y_ref[...] = (x * scale + shift).astype(y_ref.dtype)

    rm = rm_ref[...].astype(jnp.float32)
    rv = rv_ref[...].astype(jnp.float32)
    nrm_ref[...] = ((1.0 - momentum) * rm + momentum * mean).astype(nrm_ref.dtype)
    nrv_ref[...] = ((1.0 - momentum) * rv + momentum * var).astype(nrv_ref.dtype)


def _bn_stats_kernel(x_ref, gamma_ref, beta_ref, rm_ref, rv_ref,
                     scale_ref, shift_ref, nrm_ref, nrv_ref,
                     sum_acc, sq_acc, *, eps, momentum, n_total):
    """Large-N fallback, pass 1: batch-tiled per-feature sum / sum-of-squares.

    Grid = (num_feature_tiles, num_batch_tiles); batch axis is last and
    "arbitrary" so the (1, TF) accumulators stay resident across it.
    """
    b = pl.program_id(1)

    @pl.when(b == 0)
    def _():
        sum_acc[...] = jnp.zeros_like(sum_acc)
        sq_acc[...] = jnp.zeros_like(sq_acc)

    x = x_ref[...].astype(jnp.float32)           # (batch_tile, TF)
    # Mask padded rows of a partial last batch block.
    row = b * x.shape[0] + jax.lax.broadcasted_iota(jnp.int32, x.shape, 0)
    xm = jnp.where(row < n_total, x, 0.0)
    sum_acc[...] += jnp.sum(xm, axis=0, keepdims=True)
    sq_acc[...] += jnp.sum(xm * xm, axis=0, keepdims=True)

    @pl.when(b == pl.num_programs(1) - 1)
    def _():
        inv_n = 1.0 / n_total
        mean = sum_acc[...] * inv_n
        # One-pass biased variance (E[x^2] - mean^2), clamped at 0.
        var = jnp.maximum(sq_acc[...] * inv_n - mean * mean, 0.0)
        inv_std = jax.lax.rsqrt(var + eps)
        gamma = gamma_ref[...].astype(jnp.float32)
        beta = beta_ref[...].astype(jnp.float32)
        scale = gamma * inv_std
        shift = beta - mean * scale
        scale_ref[...] = scale
        shift_ref[...] = shift
        rm = rm_ref[...].astype(jnp.float32)
        rv = rv_ref[...].astype(jnp.float32)
        nrm_ref[...] = ((1.0 - momentum) * rm + momentum * mean).astype(nrm_ref.dtype)
        nrv_ref[...] = ((1.0 - momentum) * rv + momentum * var).astype(nrv_ref.dtype)


def _bn_apply_kernel(x_ref, scale_ref, shift_ref, y_ref):
    """Large-N fallback, pass 2: y = x*scale + shift (elementwise)."""
    x = x_ref[...].astype(jnp.float32)
    y_ref[...] = (x * scale_ref[...] + shift_ref[...]).astype(y_ref.dtype)


# ---------------------------------------------------------------------------
# Tiling helpers
# ---------------------------------------------------------------------------

_LANE = 128


def _round_up(x, m):
    return ((x + m - 1) // m) * m


def _vmem_capacity_bytes():
    """Physical VMEM per core (64 MiB on v7x, 128 MiB on v5e/v6e)."""
    try:
        return int(pltpu.get_tpu_info().vmem_capacity_bytes)
    except Exception:
        return 64 << 20  # conservative fallback


def _tensorcore_count(vmem_cap):
    """Best-effort TC-per-chip count; heuristic: 64 MiB/core VMEM => v7x (2 TCs)."""
    try:
        info = pltpu.get_tpu_info()
        for attr in ("num_tensorcores", "tensorcore_count", "num_cores", "core_count"):
            v = getattr(info, attr, None)
            if v:
                return int(v)
    except Exception:
        pass
    return 2 if vmem_cap <= (64 << 20) else 1


def _feature_candidates(F, cap):
    """Lane-dense feature-tile candidates (multiples of 128, plus F itself)."""
    cands = set()
    t = _LANE
    while t < F:
        cands.add(t)
        t += _LANE
    cands.add(F)
    if cap is not None:
        capped = {c for c in cands if c <= cap}
        if capped:
            cands = capped
    return cands


def _pick_feat_tile(N, F, tile_budget_bytes, per_elem_bytes, cap):
    """Largest lane-dense feature tile whose full-N column fits the budget."""
    cands = _feature_candidates(F, cap)
    for ft in sorted(cands, reverse=True):
        if N * ft * per_elem_bytes <= tile_budget_bytes:
            return ft, True
    return min(cands), False


# ---------------------------------------------------------------------------
# Wrapper
# ---------------------------------------------------------------------------

def my_batch_norm(x, gamma, beta, running_mean, running_var,
                  *, eps=1e-5, momentum=0.1,
                  feat_tile=None, batch_tile=None, force_two_pass=False):
    """Training-mode forward of MyBatchNorm.

    x: (N, F).  gamma/beta/running_*: (F,).
    Returns (y, new_running_mean, new_running_var).
    """
    # TODO(synk): eval-mode branch (normalize with running stats) not implemented;
    # only the training-mode forward is translated.
    N, F = x.shape
    bytes_x = jnp.dtype(x.dtype).itemsize
    bytes_y = bytes_x
    # f32 working copies the kernel materializes per tile: `diff` (always),
    # plus the x.astype(float32) copy when x is not already f32.
    n_f32_tmp = 1 + (0 if x.dtype == jnp.float32 else 1)
    # x in + y out, each double-buffered by the pipeline, plus f32 temporaries.
    per_elem_bytes = 2 * bytes_x + 2 * bytes_y + 4 * n_f32_tmp

    vmem_cap = _vmem_capacity_bytes()
    n_cores = _tensorcore_count(vmem_cap)
    budget_frac = 0.45 if vmem_cap <= (64 << 20) else 0.6
    tile_budget = int(vmem_cap * budget_frac)
    vmem_limit = int(vmem_cap * 0.9)

    # On multi-TC chips (v7x) guarantee grid >= 2 so the "parallel" feature
    # axis can shard across cores; single-TC chips keep the largest tile.
    cap = None
    if n_cores >= 2 and F >= 2 * _LANE:
        cap = _round_up(max(F // 2, _LANE), _LANE)

    if feat_tile is not None:
        fused_feat_tile, fits = feat_tile, True
    else:
        fused_feat_tile, fits = _pick_feat_tile(N, F, tile_budget, per_elem_bytes, cap)
    if force_two_pass:
        fits = False

    g2 = gamma.reshape(1, F).astype(jnp.float32)
    b2 = beta.reshape(1, F).astype(jnp.float32)
    rm2 = running_mean.reshape(1, F).astype(jnp.float32)
    rv2 = running_var.reshape(1, F).astype(jnp.float32)

    if fits:
        # ---------------- fused single-pass path ----------------
        grid = (pl.cdiv(F, fused_feat_tile),)
        x_spec = pl.BlockSpec((N, fused_feat_tile), lambda j: (0, j))
        vec_spec = pl.BlockSpec((1, fused_feat_tile), lambda j: (0, j))
        kernel = functools.partial(_bn_fused_kernel, eps=eps, momentum=momentum)

        cost = pl.CostEstimate(
            flops=7 * N * F,
            transcendentals=F,
            bytes_accessed=N * F * (bytes_x + bytes_y) + 6 * F * 4,
        )

        y, nrm, nrv = pl.pallas_call(
            kernel,
            out_shape=(
                jax.ShapeDtypeStruct((N, F), x.dtype),
                jax.ShapeDtypeStruct((1, F), jnp.float32),
                jax.ShapeDtypeStruct((1, F), jnp.float32),
            ),
            grid_spec=pltpu.PrefetchScalarGridSpec(
                num_scalar_prefetch=0,
                grid=grid,
                in_specs=[x_spec, vec_spec, vec_spec, vec_spec, vec_spec],
                out_specs=[x_spec, vec_spec, vec_spec],
            ),
            compiler_params=pltpu.CompilerParams(
                dimension_semantics=("parallel",),
                vmem_limit_bytes=vmem_limit,
            ),
            input_output_aliases={3: 1, 4: 2},   # running_mean -> nrm, running_var -> nrv
            cost_estimate=cost,
        )(x, g2, b2, rm2, rv2)
        return y, nrm.reshape(F), nrv.reshape(F)

    # ---------------- large-N fallback: batch-tiled two-pass path ----------------
    if feat_tile is not None:
        feat_tile_fb = feat_tile
    else:
        cands = _feature_candidates(F, cap)
        feat_tile_fb = None
        for c in sorted(cands, reverse=True):
            if 8 * c * per_elem_bytes <= tile_budget:
                feat_tile_fb = c
                break
        if feat_tile_fb is None:
            feat_tile_fb = min(cands)

    if batch_tile is None:
        per_row = max(feat_tile_fb * per_elem_bytes, 1)
        batch_tile = max(8, (tile_budget // per_row) // 8 * 8)
    if batch_tile >= N:
        batch_tile = N   # full extent is always a legal block dim

    nf = pl.cdiv(F, feat_tile_fb)
    nb = pl.cdiv(N, batch_tile)

    x_tile_spec = pl.BlockSpec((batch_tile, feat_tile_fb), lambda f, b: (b, f))
    vec_spec2 = pl.BlockSpec((1, feat_tile_fb), lambda f, b: (0, f))

    stats_kernel = functools.partial(
        _bn_stats_kernel, eps=eps, momentum=momentum, n_total=N)

    scale, shift, nrm, nrv = pl.pallas_call(
        stats_kernel,
        out_shape=(
            jax.ShapeDtypeStruct((1, F), jnp.float32),
            jax.ShapeDtypeStruct((1, F), jnp.float32),
            jax.ShapeDtypeStruct((1, F), jnp.float32),
            jax.ShapeDtypeStruct((1, F), jnp.float32),
        ),
        grid_spec=pltpu.PrefetchScalarGridSpec(
            num_scalar_prefetch=0,
            grid=(nf, nb),
            in_specs=[x_tile_spec, vec_spec2, vec_spec2, vec_spec2, vec_spec2],
            out_specs=[vec_spec2, vec_spec2, vec_spec2, vec_spec2],
            scratch_shapes=[pltpu.VMEM((1, feat_tile_fb), jnp.float32),
                            pltpu.VMEM((1, feat_tile_fb), jnp.float32)],
        ),
        compiler_params=pltpu.CompilerParams(
            dimension_semantics=("parallel", "arbitrary"),
            vmem_limit_bytes=vmem_limit,
        ),
        input_output_aliases={3: 2, 4: 3},
        cost_estimate=pl.CostEstimate(
            flops=4 * N * F, transcendentals=F,
            bytes_accessed=N * F * bytes_x + 10 * F * 4),
    )(x, g2, b2, rm2, rv2)

    y = pl.pallas_call(
        _bn_apply_kernel,
        out_shape=jax.ShapeDtypeStruct((N, F), x.dtype),
        grid_spec=pltpu.PrefetchScalarGridSpec(
            num_scalar_prefetch=0,
            grid=(nf, nb),
            in_specs=[x_tile_spec, vec_spec2, vec_spec2],
            out_specs=x_tile_spec,
        ),
        compiler_params=pltpu.CompilerParams(
            dimension_semantics=("parallel", "parallel"),
            vmem_limit_bytes=vmem_limit,
        ),
        cost_estimate=pl.CostEstimate(
            flops=2 * N * F, transcendentals=0,
            bytes_accessed=N * F * (bytes_x + bytes_y) + 2 * F * 4),
    )(x, scale, shift)

    return y, nrm.reshape(F), nrv.reshape(F)


# ---------------------------------------------------------------------------
# Test harness
# ---------------------------------------------------------------------------

def _reference(x, gamma, beta, rm, rv, eps, momentum):
    bm = jnp.mean(x, axis=0)
    bv = jnp.mean((x - bm) ** 2, axis=0)          # biased (unbiased=False)
    y = gamma * ((x - bm) / jnp.sqrt(bv + eps)) + beta
    nrm = (1 - momentum) * rm + momentum * bm
    nrv = (1 - momentum) * rv + momentum * bv
    return y, nrm, nrv


def _run_case(key, N, F, eps, momentum, **kwargs):
    x = jax.random.normal(key, (N, F), dtype=jnp.float32) * 2.0 + 0.5
    gamma = jnp.ones((F,), jnp.float32)
    beta = jnp.zeros((F,), jnp.float32)
    rm = jnp.zeros((F,), jnp.float32)
    rv = jnp.ones((F,), jnp.float32)

    y, nrm, nrv = my_batch_norm(x, gamma, beta, rm, rv,
                                eps=eps, momentum=momentum, **kwargs)
    jax.block_until_ready((y, nrm, nrv))

    y_ref, rm_ref, rv_ref = _reference(x, gamma, beta, rm, rv, eps, momentum)
    assert jnp.allclose(y, y_ref, atol=1e-4, rtol=1e-4), "y mismatch"
    assert jnp.allclose(nrm, rm_ref, atol=1e-5, rtol=1e-5), "running_mean mismatch"
    assert jnp.allclose(nrv, rv_ref, atol=1e-4, rtol=1e-4), "running_var mismatch"


if __name__ == "__main__":
    key = jax.random.PRNGKey(0)
    k1, k2, k3 = jax.random.split(key, 3)
    eps, momentum = 1e-5, 0.1

    # 1) Fused path, F divisible by 128 (batch=8, num_features=256).
    _run_case(k1, 8, 256, eps, momentum)

    # 2) Fused path with F not a multiple of 128 (partial last feature block).
    _run_case(k2, 8, 200, eps, momentum, feat_tile=128)

    # 3) Forced batch-tiled two-pass fallback (partial last batch block).
    _run_case(k3, 20, 384, eps, momentum,
              feat_tile=128, batch_tile=8, force_two_pass=True)

    print("KERNEL_OK")
</pallas_src>

<mosaic_0001>
module attributes {stable_mosaic.version = 11 : i64} {
  func.func @_bn_fused_kernel(%arg0: i32, %arg1: memref<8x128xf32, #tpu.memory_space<vmem>>, %arg2: memref<1x128xf32, #tpu.memory_space<vmem>>, %arg3: memref<1x128xf32, #tpu.memory_space<vmem>>, %arg4: memref<1x128xf32, #tpu.memory_space<vmem>>, %arg5: memref<1x128xf32, #tpu.memory_space<vmem>>, %arg6: memref<8x128xf32, #tpu.memory_space<vmem>>, %arg7: memref<1x128xf32, #tpu.memory_space<vmem>>, %arg8: memref<1x128xf32, #tpu.memory_space<vmem>>) attributes {dimension_semantics = [#tpu.dimension_semantics<parallel>], iteration_bounds = array<i64: 2>, scalar_prefetch = 0 : i64, scratch_operands = 0 : i64, tpu.core_type = #tpu.core_type<tc>, window_params = [{transform_indices = @transform_0, window_bounds = array<i64: 8, 128>}, {transform_indices = @transform_1, window_bounds = array<i64: 1, 128>}, {transform_indices = @transform_2, window_bounds = array<i64: 1, 128>}, {transform_indices = @transform_3, window_bounds = array<i64: 1, 128>}, {transform_indices = @transform_4, window_bounds = array<i64: 1, 128>}, {transform_indices = @transform_5, window_bounds = array<i64: 8, 128>}, {transform_indices = @transform_6, window_bounds = array<i64: 1, 128>}, {transform_indices = @transform_7, window_bounds = array<i64: 1, 128>}]} {
    %c0 = arith.constant 0 : index
    %c0_0 = arith.constant 0 : index
    %0 = vector.load %arg1[%c0, %c0_0] : memref<8x128xf32, #tpu.memory_space<vmem>>, vector<8x128xf32>
    %cst = arith.constant dense<0.000000e+00> : vector<128xf32>
    %1 = vector.multi_reduction <add>, %0, %cst [0] : vector<8x128xf32> to vector<128xf32>
    %2 = vector.shape_cast %1 : vector<128xf32> to vector<1x128xf32>
    %cst_1 = arith.constant 1.250000e-01 : f32
    %3 = vector.broadcast %cst_1 : f32 to vector<1x128xf32>
    %4 = arith.mulf %2, %3 : vector<1x128xf32>
    %5 = vector.broadcast %4 : vector<1x128xf32> to vector<8x128xf32>
    %6 = arith.subf %0, %5 : vector<8x128xf32>
    %7 = arith.mulf %6, %6 : vector<8x128xf32>
    %cst_2 = arith.constant dense<0.000000e+00> : vector<128xf32>
    %8 = vector.multi_reduction <add>, %7, %cst_2 [0] : vector<8x128xf32> to vector<128xf32>
    %9 = vector.shape_cast %8 : vector<128xf32> to vector<1x128xf32>
    %cst_3 = arith.constant 1.250000e-01 : f32
    %10 = vector.broadcast %cst_3 : f32 to vector<1x128xf32>
    %11 = arith.mulf %9, %10 : vector<1x128xf32>
    %cst_4 = arith.constant 9.99999974E-6 : f32
    %12 = vector.broadcast %cst_4 : f32 to vector<1x128xf32>
    %13 = arith.addf %11, %12 : vector<1x128xf32>
    %14 = math.rsqrt %13 : vector<1x128xf32>
    %c0_5 = arith.constant 0 : index
    %c0_6 = arith.constant 0 : index
    %15 = vector.load %arg2[%c0_5, %c0_6] : memref<1x128xf32, #tpu.memory_space<vmem>>, vector<1x128xf32>
    %c0_7 = arith.constant 0 : index
    %c0_8 = arith.constant 0 : index
    %16 = vector.load %arg3[%c0_7, %c0_8] : memref<1x128xf32, #tpu.memory_space<vmem>>, vector<1x128xf32>
    %17 = arith.mulf %15, %14 : vector<1x128xf32>
    %18 = arith.mulf %4, %17 : vector<1x128xf32>
    %19 = arith.subf %16, %18 : vector<1x128xf32>
    %20 = vector.broadcast %17 : vector<1x128xf32> to vector<8x128xf32>
    %21 = arith.mulf %0, %20 : vector<8x128xf32>
    %22 = vector.broadcast %19 : vector<1x128xf32> to vector<8x128xf32>
    %23 = arith.addf %21, %22 : vector<8x128xf32>
    %c0_9 = arith.constant 0 : index
    %c0_10 = arith.constant 0 : index
    %24 = vector.load %arg6[%c0_9, %c0_10] : memref<8x128xf32, #tpu.memory_space<vmem>>, vector<8x128xf32>
    tpu.vector_store %arg6[%c0_9, %c0_10], %23 {strides = array<i32>} : memref<8x128xf32, #tpu.memory_space<vmem>>, vector<8x128xf32>,
    %c0_11 = arith.constant 0 : index
    %c0_12 = arith.constant 0 : index
    %25 = vector.load %arg4[%c0_11, %c0_12] : memref<1x128xf32, #tpu.memory_space<vmem>>, vector<1x128xf32>
    %c0_13 = arith.constant 0 : index
    %c0_14 = arith.constant 0 : index
    %26 = vector.load %arg5[%c0_13, %c0_14] : memref<1x128xf32, #tpu.memory_space<vmem>>, vector<1x128xf32>
    %cst_15 = arith.constant 0.899999976 : f32
    %27 = vector.broadcast %cst_15 : f32 to vector<1x128xf32>
    %28 = arith.mulf %27, %25 : vector<1x128xf32>
    %cst_16 = arith.constant 1.000000e-01 : f32
    %29 = vector.broadcast %cst_16 : f32 to vector<1x128xf32>
    %30 = arith.mulf %29, %4 : vector<1x128xf32>
    %31 = arith.addf %28, %30 : vector<1x128xf32>
    %c0_17 = arith.constant 0 : index
    %c0_18 = arith.constant 0 : index
    %32 = vector.load %arg7[%c0_17, %c0_18] : memref<1x128xf32, #tpu.memory_space<vmem>>, vector<1x128xf32>
    tpu.vector_store %arg7[%c0_17, %c0_18], %31 {strides = array<i32>} : memref<1x128xf32, #tpu.memory_space<vmem>>, vector<1x128xf32>,
    %cst_19 = arith.constant 0.899999976 : f32
    %33 = vector.broadcast %cst_19 : f32 to vector<1x128xf32>
    %34 = arith.mulf %33, %26 : vector<1x128xf32>
    %cst_20 = arith.constant 1.000000e-01 : f32
    %35 = vector.broadcast %cst_20 : f32 to vector<1x128xf32>
    %36 = arith.mulf %35, %11 : vector<1x128xf32>
    %37 = arith.addf %34, %36 : vector<1x128xf32>
    %c0_21 = arith.constant 0 : index
    %c0_22 = arith.constant 0 : index
    %38 = vector.load %arg8[%c0_21, %c0_22] : memref<1x128xf32, #tpu.memory_space<vmem>>, vector<1x128xf32>
    tpu.vector_store %arg8[%c0_21, %c0_22], %37 {strides = array<i32>} : memref<1x128xf32, #tpu.memory_space<vmem>>, vector<1x128xf32>,
    return
  }
  func.func @transform_0(%arg0: i32) -> (i32, i32) {
    %c0_i32 = arith.constant 0 : i32
    %c0_i32_0 = arith.constant 0 : i32
    return %c0_i32, %arg0 : i32, i32
  }
  func.func @transform_1(%arg0: i32) -> (i32, i32) {
    %c0_i32 = arith.constant 0 : i32
    %c0_i32_0 = arith.constant 0 : i32
    return %c0_i32, %arg0 : i32, i32
  }
  func.func @transform_2(%arg0: i32) -> (i32, i32) {
    %c0_i32 = arith.constant 0 : i32
    %c0_i32_0 = arith.constant 0 : i32
    return %c0_i32, %arg0 : i32, i32
  }
  func.func @transform_3(%arg0: i32) -> (i32, i32) {
    %c0_i32 = arith.constant 0 : i32
    %c0_i32_0 = arith.constant 0 : i32
    return %c0_i32, %arg0 : i32, i32
  }
  func.func @transform_4(%arg0: i32) -> (i32, i32) {
    %c0_i32 = arith.constant 0 : i32
    %c0_i32_0 = arith.constant 0 : i32
    return %c0_i32, %arg0 : i32, i32
  }
  func.func @transform_5(%arg0: i32) -> (i32, i32) {
    %c0_i32 = arith.constant 0 : i32
    %c0_i32_0 = arith.constant 0 : i32
    return %c0_i32, %arg0 : i32, i32
  }
  func.func @transform_6(%arg0: i32) -> (i32, i32) {
    %c0_i32 = arith.constant 0 : i32
    %c0_i32_0 = arith.constant 0 : i32
    return %c0_i32, %arg0 : i32, i32
  }
  func.func @transform_7(%arg0: i32) -> (i32, i32) {
    %c0_i32 = arith.constant 0 : i32
    %c0_i32_0 = arith.constant 0 : i32
    return %c0_i32, %arg0 : i32, i32
  }
}

</mosaic_0001>

<bundles_post_ra>
// kernel: tpu_custom_call.1
= control target key start
LH: loop header
LB: loop body
LE: loop exit
PB: predicated region body
PF: predicated region fallthrough
CT: control target
= control target key end

     0   :  { %s1264_s0 = inlined_call_operand.hbm [shape: f32[8,256], index: 0, kind: input, shape index: {}]   ;;  %s1265_s1 = inlined_call_operand.vmem [shape: f32[1,256], index: 1, kind: input, shape index: {}]   ;;  %s1266_s2 = inlined_call_operand.vmem [shape: f32[1,256], index: 2, kind: input, shape index: {}]   ;;  %s1267_s3 = inlined_call_operand.hbm [shape: f32[1,256], index: 3, kind: input, shape index: {}, may-alias: {3,6}]   ;;  %s1268_s4 = inlined_call_operand.hbm [shape: f32[1,256], index: 4, kind: input, shape index: {}, may-alias: {4,7}]   ;;  %s1269_s5 = inlined_call_operand.hbm [shape: f32[8,256], index: 5, kind: output, shape index: {0}]   ;;  %s1270_s6 = inlined_call_operand.hbm [shape: f32[1,256], index: 6, kind: output, shape index: {1}, may-alias: {3,6}]   ;;  %s1271_s7 = inlined_call_operand.hbm [shape: f32[1,256], index: 7, kind: output, shape index: {2}, may-alias: {4,7}]  }
   0x1   :  { %1277 = sst [smem:[#allocation20_spill]] %s1267_s3 }
   0x2   :  { %13 = vsyncpa [#allocation3], 0 }
   0x3   :  { %15 = vsyncpa [#allocation3 + $0x1], 0 }
   0x4   :  { %16 = vsyncpa [#allocation6], 0 }
   0x5   :  { %18 = vsyncpa [#allocation6 + $0x1], 0 }
   0x6   :  { %19 = vsyncpa [#allocation4], 0 }
   0x7   :  { %21 = vsyncpa [#allocation4 + $0x1], 0 }
   0x8   :  { %22 = vsyncpa [#allocation10], 0 }
   0x9   :  { %24 = vsyncpa [#allocation10 + $0x1], 0  ;;  %s1027_s24 = smov 0   ;;  %s1029_s25 = smov 0  }
   0xa   :  { %s1031_s26 = smov 0   ;;  %s1033_s27 = smov 0  }
   0xb LB: > { %1278 = sst [smem:[#allocation16_spill]] %s981_s26  ;;  %s1048_s28 = sadd.s32 4294967295, %s985_s27   ;;  %s985_s27 = sphi %s1033_s27, %s1290_s27   ;;  %s981_s26 = sphi %s1031_s26, %s1292_s26   ;;  %s977_s25 = sphi %s1029_s25, %s1294_s25   ;;  %s973_s24 = sphi %s1027_s24, %s1293_s24  }
   0xc   : > { %s1272_s29 = sadd.s32 4294967294, %s985_s27   ;;  %s1052_s30 = sadd.s32 1, %s985_s27  }
   0xd   : > { %1279 = sst [smem:[#allocation17_spill]] %s1052_s30  ;;  %s37_s8 = sadd.s32 1, %s981_s26 }
   0xe   : > { %s34_s9 = ssub.s32 %s985_s27, %s1052_s30  ;;  %p44_p0 = scmp.ne.s32.totalorder %s981_s26, %s977_s25 }
   0xf   : > { %p35_p1 = scmp.eq.s32.totalorder %s34_s9, 0  ;;  %p45_p2 = scmp.eq.s32.totalorder %s985_s27, 0 }
  0x10   : > { %p50_p3 = scmp.ne.s32.totalorder %s977_s25, %s973_s24  ;;  %p51_p4 = scmp.eq.s32.totalorder %s1048_s28, 0 }
  0x11   : > { %s1064_s10 = scalar_select %p35_p1, %s981_s26, %s37_s8  }
  0x12   : > { %p46_p5 = por %p45_p2, %p44_p0  ;;  %p1066_p6 = por %p51_p4, %p50_p3 }
  0x13   : > { %1280 = sst [smem:[#allocation18_spill]] %s1064_s10  ;;  %p178_p7 = scmp.eq.s32.totalorder %s1048_s28, 1 }
  0x14   : > { %p184_p8 = scmp.eq.s32.totalorder %s1272_s29, 1  ;;  %p687_p9 = scmp.ge.s32.totalorder %s985_s27, 2 }
  0x15   : > { %p729_p10 = scmp.lt.s32.totalorder %s985_s27, 2  ;;  %p1075_p11 = por %p178_p7, %p44_p0 }
  0x16   : > { %p1079_p12 = por %p184_p8, %p50_p3  ;;  %s1084_s14 = sand.u32 1, %s981_s26  }
  0x17   : > { %p1086_p13 = pnand %p729_p10, %p46_p5  ;;  %s287_s16 = sand.u32 1, %s985_s27  }
  0x18   : > { %s1283_s13 = scalar_select %p1079_p12, 1, 0 }
  0x19   : > { %s1286_s3 = sld [smem:[#allocation20_spill]]  ;;  %s290_s20 = scalar_lea.vmem [#allocation5], %s1084_s14 }
  0x1a   : > { %1284 = sst [smem:[#allocation19_spill]] %s1283_s13  ;;  %s297_s21 = sshll.u32 %s290_s20, 4  ;;  %s298_s21 = int_to_ptr.vmem [resolvable:$true] %s297_s21 }
  0x1b   : > { %p690_p0 = scmp.ge.s32.totalorder %s985_s27, 1  ;;  %s1097_s23 = scalar_lea.sflag [#allocation6], %s287_s16 }
  0x1c   : > { %p769_p2 = pneg %p1086_p13 }
  0x1f   : > { %s293_s19 = scalar_lea.hbm %s1286_s3, %s985_s27  ;;  %s772_s20 = scalar_lea.hbm %s1286_s3, 2 }
  0x20   : > { %s295_s22 = sshll.u32 %s293_s19, 4  ;;  %s296_s22 = int_to_ptr.hbm [resolvable:$true] %s295_s22 }
  0x21   : > { %s765_s8 = sshra.s32 %s296_s22, 4  ;;  %s766_s8 = int_to_ptr.hbm [resolvable:$true] %s765_s8 }
  0x22   : > { %s767_s9 = scalar_lea.hbm %s766_s8, 1  ;;  %p773_p5 = scmp.lt.s32.totalorder %s766_s8, %s1286_s3 }
  0x23   : > { %p768_p1 = scmp.ne.s32.totalorder %s766_s8, %s767_s9  ;;  %p774_p7 = scmp.lt.s32.totalorder %s772_s20, %s767_s9 }
  0x25   : > { %p770_p3 = pnand %p769_p2, %p768_p1  ;;  %p775_p8 = por %p774_p7, %p773_p5 }
  0x27   : > { %p771_p4 = pneg %p770_p3 }
  0x29   : > { %p776_p10 = pnand %p775_p8, %p771_p4 }
  0x2b   : > { %779 = shalt.err (!%p776_p10)
}
  0x2c   : > { %715 = dma.hbm_to_vmem [thread:$0]  (!%p1086_p13), %s296_s22, 16, %s298_s21, %s1097_s23  }
  0x2d   : > { %p319_p1 = scmp.lt.s32.totalorder %s985_s27, 3  ;;  %s688_s16 = sshll.u32 %s1084_s14, 3 }
  0x2e   : > { %s689_s17 = sshll.u32 %s985_s27, 3  ;;  %s260_s20 = scalar_lea.vmem [#allocation2], %s688_s16 }
  0x2f   : > { %p1118_p3 = pnand %p690_p0, %p319_p1  ;;  %s264_s18 = scalar_lea.hbm %s1264_s0, %s689_s17 }
  0x30   : > { %s268_s19 = sshll.u32 %s260_s20, 4  ;;  %s266_s3 = sshll.u32 %s264_s18, 4  ;;  %s269_s19 = int_to_ptr.vmem [resolvable:$true] %s268_s19  ;;  %s267_s3 = int_to_ptr.hbm [resolvable:$true] %s266_s3 }
  0x31   : > { %s257_s10 = scalar_lea.sflag [#allocation3], %s1084_s14  ;;  %s795_s21 = sshra.s32 %s267_s3, 4  ;;  %s796_s21 = int_to_ptr.hbm [resolvable:$true] %s795_s21 }
  0x32   : > { %s797_s22 = scalar_lea.hbm %s796_s21, 8  ;;  %s802_s13 = scalar_lea.hbm %s1264_s0, 16 }
  0x33   : > { %p798_p4 = scmp.ne.s32.totalorder %s796_s21, %s797_s22  ;;  %p803_p7 = scmp.lt.s32.totalorder %s796_s21, %s1264_s0 }
  0x34   : > { %p804_p8 = scmp.lt.s32.totalorder %s802_s13, %s797_s22 }
  0x35   : > { %p800_p0 = pnand %p798_p4, %p769_p2 }
  0x36   : > { %p805_p10 = por %p804_p8, %p803_p7 }
  0x37   : > { %p801_p5 = pneg %p800_p0 }
  0x39   : > { %p806_p1 = pnand %p805_p10, %p801_p5 }
  0x3b   : > { %809 = shalt.err (!%p806_p1)
}
  0x3c   : > { %712 = dma.hbm_to_vmem [thread:$0]  (!%p1086_p13), %s267_s3, 128, %s269_s19, %s257_s10  }
  0x3d   : > { %s310_s18 = scalar_lea.hbm %s1268_s4, %s985_s27  ;;  %s307_s26 = scalar_lea.vmem [#allocation7], %s1084_s14 }
  0x3e   : > { %s314_s30 = sshll.u32 %s307_s26, 4  ;;  %s312_s20 = sshll.u32 %s310_s18, 4  ;;  %s315_s30 = int_to_ptr.vmem [resolvable:$true] %s314_s30  ;;  %s313_s20 = int_to_ptr.hbm [resolvable:$true] %s312_s20 }
  0x3f   : > { %s825_s21 = sshra.s32 %s313_s20, 4  ;;  %s832_s3 = scalar_lea.hbm %s1268_s4, 2  ;;  %s826_s21 = int_to_ptr.hbm [resolvable:$true] %s825_s21 }
  0x40   : > { %s827_s13 = scalar_lea.hbm %s826_s21, 1  ;;  %p833_p7 = scmp.lt.s32.totalorder %s826_s21, %s1268_s4 }
  0x41   : > { %p828_p4 = scmp.ne.s32.totalorder %s826_s21, %s827_s13  ;;  %p834_p8 = scmp.lt.s32.totalorder %s832_s3, %s827_s13 }
  0x43   : > { %p830_p0 = pnand %p828_p4, %p769_p2  ;;  %p835_p10 = por %p834_p8, %p833_p7 }
  0x45   : > { %p831_p5 = pneg %p830_p0 }
  0x47   : > { %p836_p1 = pnand %p835_p10, %p831_p5 }
  0x49   : > { %839 = shalt.err (!%p836_p1)
}
  0x4a   : > { %718 = dma.hbm_to_vmem [thread:$0]  (!%p1086_p13), %s313_s20, 16, %s315_s30, %s1097_s23  }
  0x4b   : > { %323 = sbr.rel (%p1118_p3) target bundleno = 150 (0x96), region = 40  ;;  %s1157_s14 = sand.u32 (!%p1118_p3), 1, %s977_s25  }
  0x4c   : > { %s691_s17 = sshll.u32 (!%p1118_p3), %s1157_s14, 3  ;;  %s326_s16 = scalar_lea.sflag (!%p1118_p3), [#allocation3], %s1157_s14 }
  0x4d   : > { %s329_s9 = scalar_lea.vmem (!%p1118_p3), [#allocation2], %s691_s17 }
  0x50   : > { %956 = dma.done.wait (%p1066_p6), %s326_s16, 128  }
  0x51   : > { %958 = vsyncadd (%p1066_p6), %s326_s16, 4294967168  ;;  %s335_s15 = sand.u32 1, %s1048_s28   ;;  %s338_s29 = scalar_lea.vmem [#allocation5], %s1157_s14 }
  0x52   : > { %s336_s23 = scalar_lea.sflag [#allocation6], %s335_s15 }
  0x53   : > { %960 = dma.done.wait (%p1066_p6), %s336_s23, 32  }
  0x54   : > { %962 = vsyncadd (%p1066_p6), %s336_s23, 4294967264  ;;  %v1173_v0 = vld [vmem:[%s329_s9] sm:$0xff]  ;;  %s491_s30 = scalar_lea.hbm %s1270_s6, %s1048_s28  ;;  %s394_s11 = scalar_lea.vmem [#allocation9], %s1157_s14 }
  0x55   : > { %v408_v1 = vrot.slane %v1173_v0, 4  ;;  %v449_v6 = vld [vmem:[%s338_s29] sm:$0x1]  ;;  %s493_s20 = sshll.u32 %s394_s11, 4  ;;  %s495_s21 = sshll.u32 %s491_s30, 4  ;;  %s494_s20 = int_to_ptr.vmem [resolvable:$true] %s493_s20  ;;  %s496_s21 = int_to_ptr.hbm [resolvable:$true] %s495_s21 }
  0x56   : > { %v451_v9 = vmul.f32 0.9, %v449_v6  ;;  %s1187_s13 = scalar_lea.sflag [#allocation10], %s335_s15  ;;  %s869_s22 = sshra.s32 %s496_s21, 4  ;;  %s870_s22 = int_to_ptr.hbm [resolvable:$true] %s869_s22 }
  0x57   : > { %v409_v2 = vadd.f32 %v408_v1, %v1173_v0  ;;  %s871_s8 = scalar_lea.hbm %s870_s22, 1  ;;  %s875_s19 = scalar_lea.hbm %s1270_s6, 2 }
  0x58   : > { %p872_p6 = scmp.ne.s32.totalorder %s870_s22, %s871_s8  ;;  %p876_p3 = scmp.lt.s32.totalorder %s870_s22, %s1270_s6 }
  0x59   : > { %v410_v3 = vrot.slane %v409_v2, 2  ;;  %p877_p4 = scmp.lt.s32.totalorder %s875_s19, %s871_s8 }
  0x5a   : > { %p873_p13 = pnand %p872_p6, %p1075_p11 }
  0x5b   : > { %v411_v4 = vadd.f32 %v410_v3, %v409_v2  ;;  %p878_p0 = por %p877_p4, %p876_p3 }
  0x5c   : > { %p874_p2 = pneg %p873_p13 }
  0x5d   : > { %v412_v5 = vrot.slane %v411_v4, 1 }
  0x5e   : > { %p879_p5 = pnand %p878_p0, %p874_p2 }
  0x5f   : > { %v413_v7 = vadd.f32 %v412_v5, %v411_v4 }
  0x61   : > { %v1181_v8 = vmul.f32 0.125, %v413_v7 }
  0x63   : > { %v415_v10 = vsub.f32 %v1173_v0, %v1181_v8  ;;  %v452_v11 = vmul.f32 0.1, %v1181_v8 }
  0x65   : > { %v416_v12 = vmul.f32 %v415_v10, %v415_v10  ;;  %v453_v13 = vadd.f32 %v452_v11, %v451_v9 }
  0x67   : > { %v417_v14 = vrot.slane %v416_v12, 4  ;;  %454 = vst [vmem:[%s394_s11] sm:$0x1] %v453_v13 }
  0x68   : > { %882 = shalt.err (!%p879_p5)
}
  0x69   : > { %704 = dma.vmem_to_hbm [thread:$0]  (%p1075_p11), %s494_s20, 16, %s496_s21, %s1187_s13   ;;  %v418_v15 = vadd.f32 %v417_v14, %v416_v12 }
  0x6a   : > { %s347_s15 = scalar_lea.vmem [#allocation7], %s1157_s14  ;;  %s504_s18 = scalar_lea.hbm %s1271_s7, %s1048_s28 }
  0x6b   : > { %v419_v16 = vrot.slane %v418_v15, 2  ;;  %v450_v19 = vld [vmem:[%s347_s15] sm:$0x1]  ;;  %s400_s26 = scalar_lea.vmem [#allocation11], %s1157_s14  ;;  %s508_s11 = sshll.u32 %s504_s18, 4  ;;  %s509_s11 = int_to_ptr.hbm [resolvable:$true] %s508_s11 }
  0x6c   : > { %v455_v22 = vmul.f32 0.9, %v450_v19  ;;  %s506_s30 = sshll.u32 %s400_s26, 4  ;;  %s897_s20 = sshra.s32 %s509_s11, 4  ;;  %s507_s30 = int_to_ptr.vmem [resolvable:$true] %s506_s30  ;;  %s898_s20 = int_to_ptr.hbm [resolvable:$true] %s897_s20 }
  0x6d   : > { %v420_v17 = vadd.f32 %v419_v16, %v418_v15  ;;  %s899_s21 = scalar_lea.hbm %s898_s20, 1  ;;  %s903_s3 = scalar_lea.hbm %s1271_s7, 2 }
  0x6e   : > { %p900_p7 = scmp.ne.s32.totalorder %s898_s20, %s899_s21  ;;  %p904_p1 = scmp.lt.s32.totalorder %s898_s20, %s1271_s7 }
  0x6f   : > { %v421_v18 = vrot.slane %v420_v17, 1  ;;  %p905_p6 = scmp.lt.s32.totalorder %s903_s3, %s899_s21 }
  0x70   : > { %p901_p8 = pnand %p900_p7, %p1075_p11 }
  0x71   : > { %v422_v20 = vadd.f32 %v421_v18, %v420_v17  ;;  %p906_p13 = por %p905_p6, %p904_p1 }
  0x72   : > { %p902_p10 = pneg %p901_p8 }
  0x73   : > { %v423_v21 = vmul.f32 0.125, %v422_v20 }
  0x74   : > { %p907_p2 = pnand %p906_p13, %p902_p10 }
  0x75   : > { %v424_v23 = vadd.f32 1e-05, %v423_v21  ;;  %v456_v24 = vmul.f32 0.1, %v423_v21 }
  0x77   : > { %763 = vrsqrt.f32 %v424_v23  ;;  %v457_v25 = vadd.f32 %v456_v24, %v455_v22 }
  0x79   : > { %458 = vst [vmem:[%s400_s26] sm:$0x1] %v457_v25 }
  0x7a   : > { %910 = shalt.err (!%p907_p2)
}
  0x7b   : > { %705 = dma.vmem_to_hbm [thread:$0]  (%p1075_p11), %s507_s30, 16, %s509_s11, %s1187_s13   ;;  %vm431_vm0 = vweird.f32 %v424_v23 }
  0x7c   : > { %p401_p3 = scmp.lt.s32.totalorder %s1048_s28, 1  ;;  %s694_s26 = sshll.u32 %s1048_s28, 3 }
  0x7d   : > { %v764_v26 = vpop.eup %763  ;;  %s478_s20 = scalar_lea.hbm %s1269_s5, %s694_s26  ;;  %s388_s21 = scalar_lea.vmem [#allocation8], %s691_s17 }
  0x7e   : > { %v426_v27 = vmul.f32 %v764_v26, %v424_v23  ;;  %s402_s16 = scalar_select %p401_p3, %s1048_s28, 1  ;;  %vm432_vm1 = vweird.f32 %v764_v26 }
  0x7f   : > { %vm433_vm2 = vmor %vm431_vm0, %vm432_vm1  ;;  %s480_s22 = sshll.u32 %s388_s21, 4  ;;  %s482_s8 = sshll.u32 %s478_s20, 4  ;;  %s481_s22 = int_to_ptr.vmem [resolvable:$true] %s480_s22  ;;  %s483_s8 = int_to_ptr.hbm [resolvable:$true] %s482_s8 }
  0x80   : > { %v427_v28 = vmul.f32 %v764_v26, %v426_v27  ;;  %s403_s23 = scalar_lea.vmem %s1265_s1, %s402_s16  ;;  %s406_s18 = scalar_lea.vmem %s1266_s2, %s402_s16 }
  0x81   : > { %v435_v32 = vld [vmem:[%s403_s23] sm:$0x1]  ;;  %s460_s28 = scalar_lea.sflag [#allocation4], %s1157_s14  ;;  %s925_s3 = sshra.s32 %s483_s8, 4  ;;  %s926_s3 = int_to_ptr.hbm [resolvable:$true] %s925_s3 }
  0x82   : > { %v428_v29 = vmul.f32 0.5, %v427_v28  ;;  %v436_v35 = vld [vmem:[%s406_s18] sm:$0x1]  ;;  %s927_s10 = scalar_lea.hbm %s926_s3, 8  ;;  %s931_s9 = scalar_lea.hbm %s1269_s5, 16 }
  0x83   : > { %p928_p4 = scmp.ne.s32.totalorder %s926_s3, %s927_s10  ;;  %p932_p7 = scmp.lt.s32.totalorder %s926_s3, %s1269_s5 }
  0x84   : > { %v429_v30 = vsub.f32 1.5, %v428_v29  ;;  %p933_p8 = scmp.lt.s32.totalorder %s931_s9, %s927_s10 }
  0x85   : > { %p929_p0 = pnand %p928_p4, %p1075_p11 }
  0x86   : > { %v430_v31 = vmul.f32 %v764_v26, %v429_v30  ;;  %p934_p10 = por %p933_p8, %p932_p7 }
  0x87   : > { %p930_p5 = pneg %p929_p0 }
  0x88   : > { %v434_v33 = vsel %vm433_vm2, %v764_v26, %v430_v31 }
  0x89   : > { %v437_v34 = vmul.f32 %v435_v32, %v434_v33  ;;  %p935_p1 = pnand %p934_p10, %p930_p5 }
  0x8b   : > { %v438_v36 = vmul.f32 %v437_v34, %v1181_v8  ;;  %v441_v37 = vperm.slane %v437_v34, 0 }
  0x8d   : > { %v439_v38 = vsub.f32 %v436_v35, %v438_v36  ;;  %v443_v39 = vmul.f32 %v441_v37, %v1173_v0 }
  0x8f   : > { %v445_v40 = vperm.slane %v439_v38, 0 }
  0x91   : > { %v447_v41 = vadd.f32 %v445_v40, %v443_v39 }
  0x93   : > { %448 = vst [vmem:[%s388_s21] sm:$0xff] %v447_v41 }
  0x94   : > { %938 = shalt.err (!%p935_p1)
}
  0x95   : > { %703 = dma.vmem_to_hbm [thread:$0]  (%p1075_p11), %s481_s22, 128, %s483_s8, %s460_s28  }
  0x96 PF: > { %s520_s23 = sand.u32 1, %s973_s24   ;;  %p720_p6 = pnand %p687_p9, %p1079_p12 }
  0x97   : > { %s521_s29 = scalar_lea.sflag [#allocation4], %s520_s23 }
  0x98   : > { %p721_p13 = pneg %p720_p6 }
  0x9a   : > { %964 = dma.done.wait (%p721_p13), %s521_s29, 128  }
  0x9b   : > { %966 = vsyncadd (%p721_p13), %s521_s29, 4294967168  ;;  %s1289_s13 = sadd.s32 4294967294, %s985_s27  }
  0x9c   : > { %s530_s18 = sand.u32 1, %s1289_s13  }
  0x9d   : > { %s531_s26 = scalar_lea.sflag [#allocation10], %s530_s18 }
  0x9e   : > { %968 = dma.done.wait (%p721_p13), %s531_s26, 32  }
  0x9f   : > { %970 = vsyncadd (%p721_p13), %s531_s26, 4294967264  ;;  %s1290_s27 = sld [smem:[#allocation17_spill]]  ;;  %s1293_s24 = smov %s977_s25 }
  0xa0   : > { %s1291_s12 = sld [smem:[#allocation16_spill]] }
  0xa1   : > { %s1292_s26 = sld [smem:[#allocation18_spill]] }
  0xa5   : > { %p27_p11 = scmp.ge.s32.totalorder %s1290_s27, 4  }
  0xa6   : > { %s1294_s25 = smov %s1291_s12 }
  0xa7   :  { %29 = sbr.rel (!%p27_p11) target bundleno = 11 (0xb), region = 147 }
  0xac   :  { %545 = vsyncpa [#allocation3], 1 }
  0xad   :  { %547 = vsyncpa [#allocation3 + $0x1], 1 }
  0xae   :  { %548 = vsyncpa [#allocation6], 1 }
  0xaf   :  { %550 = vsyncpa [#allocation6 + $0x1], 1 }
  0xb0   :  { %551 = vsyncpa [#allocation4], 1 }
  0xb1   :  { %553 = vsyncpa [#allocation4 + $0x1], 1 }
  0xb2   :  { %554 = vsyncpa [#allocation10], 1 }
  0xb3   :  { %556 = vsyncpa [#allocation10 + $0x1], 1 }

</bundles_post_ra>
